<compile_context>
chip_gen: v5e
topology: v5e:2x2
jax: 0.10.0
libtpu: 0.0.40
codegen_flags: <defaults>
</compile_context>

<pallas_src>
import jax
import jax.numpy as jnp
import numpy as np
from jax.experimental import pallas as pl
from jax.experimental.pallas import tpu as pltpu

INPUT_DIM = 1
TIME_EMB = 16
THETA_EMB = 16
EMB2 = TIME_EMB + THETA_EMB          # 32 packed embedding lanes
HIDDEN = 128

IN_PAD = 8                           # streamed input lanes (t, x, theta, 0...)
OUT_PAD = 8                          # streamed output lanes (result in lane 0)
T_LANE, X_LANE, TH_LANE = 0, 1, 2

# rows of the (8, 32) f32 parameter stack
R_EW0_T, R_EW0_TH, R_EB0, R_EB1, R_EB2 = 0, 1, 2, 3, 4
# rows of the (8, 128) f32 parameter stack
R_W0X, R_MB0, R_MB1, R_MB2, R_W3, R_B3 = 0, 1, 2, 3, 4, 5

TB_MAX = 2048                        # max batch tile (sublane dim)

# MXU input dtype.  bf16 runs the MXU at native rate on v6e/v7x (accumulation
# stays f32 via preferred_element_type).  Set to jnp.float32 for exact-f32.
MATMUL_DTYPE = jnp.bfloat16


# ----------------------------- Pallas kernel --------------------------------
def scorenet_kernel(u_ref, wbig_ref, wemb_ref, m0e_ref, r32_ref, r128_ref, o_ref):
    f32 = jnp.float32
    mm = MATMUL_DTYPE

    u = u_ref[...]                                   # (tb, 8) f32
    t_col = u[:, T_LANE:T_LANE + 1]                  # (tb, 1)
    x_col = u[:, X_LANE:X_LANE + 1]
    th_col = u[:, TH_LANE:TH_LANE + 1]

    r32 = r32_ref[...]                               # (8, 32)  f32 rows
    r128 = r128_ref[...]                             # (8, 128) f32 rows
    ew0_t = r32[R_EW0_T:R_EW0_T + 1, :]
    ew0_th = r32[R_EW0_TH:R_EW0_TH + 1, :]
    eb0 = r32[R_EB0:R_EB0 + 1, :]
    eb1 = r32[R_EB1:R_EB1 + 1, :]
    eb2 = r32[R_EB2:R_EB2 + 1, :]
    w0x = r128[R_W0X:R_W0X + 1, :]
    mb0 = r128[R_MB0:R_MB0 + 1, :]
    mb1 = r128[R_MB1:R_MB1 + 1, :]
    mb2 = r128[R_MB2:R_MB2 + 1, :]
    w3 = r128[R_W3:R_W3 + 1, :]
    b3 = r128[R_B3:R_B3 + 1, 0:1]                    # (1, 1)

    def mm_f32(a, w):
        # bf16 MXU matmul, f32 accumulation; bias adds / ReLU stay f32 on VPU.
        return jnp.dot(a.astype(mm), w, preferred_element_type=f32)

    def relu(a):
        return jnp.maximum(a, 0.0)

    # time + theta embedding nets, packed into 32 lanes (time [0,16), theta
    # [16,32)).  Layer 0 (1->16 twice) is rank-2: two f32 VPU outer products,
    # no MXU op, no bf16 on the raw scalars.
    e = relu(t_col * ew0_t + th_col * ew0_th + eb0)          # (tb, 32)
    e = relu(mm_f32(e, wemb_ref[0]) + eb1)                   # (tb, 32)
    e = mm_f32(e, wemb_ref[1]) + eb2                         # (tb, 32)

    # main net layer 0 on concat([x, t_emb, th_emb]):
    #   embedding rows of W0 -> one (32,128) matmul on the packed embedding,
    #   scalar-x row of W0   -> f32 VPU broadcast multiply.
    h = relu(x_col * w0x + mm_f32(e, m0e_ref[...]) + mb0)    # (tb, 128)
    h = relu(mm_f32(h, wbig_ref[0]) + mb1)
    h = relu(mm_f32(h, wbig_ref[1]) + mb2)

    # final Linear 128 -> 1: rank-1, VPU multiply + XLU lane reduce (no MXU),
    # stored into an 8-lane block (only lane 0 is read back by the wrapper).
    out = jnp.sum(h * w3, axis=-1, keepdims=True) + b3       # (tb, 1) f32
    o_ref[...] = jnp.broadcast_to(out, (out.shape[0], OUT_PAD))


# ---------------------------- weight packing ---------------------------------
def pack_params(params):
    (tW, tB_), (hW, hB_), (mW, mB_) = params["time"], params["theta"], params["main"]
    f32 = jnp.float32
    mm = MATMUL_DTYPE

    def blkdiag(wt, wh):
        w = jnp.zeros((EMB2, EMB2), f32)
        w = w.at[:TIME_EMB, :TIME_EMB].set(wt)
        w = w.at[TIME_EMB:, TIME_EMB:].set(wh)
        return w

    # fused time/theta embedding layers 1 & 2: block-diagonal (32,32) weights
    w_emb = jnp.stack([blkdiag(tW[1], hW[1]), blkdiag(tW[2], hW[2])]).astype(mm)
    # main hidden layers 1 & 2: (2,128,128) stack
    w_big = jnp.stack([jnp.asarray(mW[1], f32), jnp.asarray(mW[2], f32)]).astype(mm)

    # main layer 0: W0 is (1+16+16, 128); row 0 is x, rows 1..32 act directly
    # on the packed embedding vector.
    W0 = jnp.asarray(mW[0], f32)
    m0e = W0[INPUT_DIM:INPUT_DIM + EMB2].astype(mm)          # (32, 128)

    # f32 parameter rows (kept f32: they feed the VPU paths / bias adds)
    r32 = jnp.zeros((8, EMB2), f32)
    r32 = r32.at[R_EW0_T, :TIME_EMB].set(jnp.asarray(tW[0], f32)[0])
    r32 = r32.at[R_EW0_TH, TIME_EMB:].set(jnp.asarray(hW[0], f32)[0])
    r32 = r32.at[R_EB0, :TIME_EMB].set(tB_[0])
    r32 = r32.at[R_EB0, TIME_EMB:].set(hB_[0])
    r32 = r32.at[R_EB1, :TIME_EMB].set(tB_[1])
    r32 = r32.at[R_EB1, TIME_EMB:].set(hB_[1])
    r32 = r32.at[R_EB2, :TIME_EMB].set(tB_[2])
    r32 = r32.at[R_EB2, TIME_EMB:].set(hB_[2])

    r128 = jnp.zeros((8, HIDDEN), f32)
    r128 = r128.at[R_W0X].set(W0[0])
    r128 = r128.at[R_MB0].set(mB_[0])
    r128 = r128.at[R_MB1].set(mB_[1])
    r128 = r128.at[R_MB2].set(mB_[2])
    r128 = r128.at[R_W3].set(jnp.asarray(mW[3], f32)[:, 0])
    r128 = r128.at[R_B3, 0].set(jnp.asarray(mB_[3], f32)[0])

    return w_big, w_emb, m0e, r32, r128


# ------------------------------ JAX wrapper ----------------------------------
def _pick_batch_tile(B):
    """Chip-aware batch tile: one big tile on 1-TensorCore chips (v5e/v6e);
    >= 4 grid steps on v7x (2 TensorCores) when there is enough work."""
    min_steps = 1
    try:
        kind = jax.devices()[0].device_kind.lower()
        if "v7" in kind:
            min_steps = 4 if B >= 32 else 1
    except Exception:
        pass
    tb = min(TB_MAX, max(1, -(-B // min_steps)))
    return max(8, -(-tb // 8) * 8)


def scorenet_forward(x, t, theta, params):
    """x, t, theta: (B, 1) float32. Returns (B, 1) float32."""
    B = x.shape[0]
    tb = _pick_batch_tile(B)
    Bp = -(-B // tb) * tb                        # zero-pad batch to tile multiple

    # pack the three scalar inputs into one (Bp, 8) lane row: [t, x, theta, 0..]
    u = jnp.concatenate(
        [t[:, :1], x[:, :1], theta[:, :1],
         jnp.zeros((B, IN_PAD - 3), jnp.float32)], axis=1)
    if Bp > B:
        u = jnp.concatenate([u, jnp.zeros((Bp - B, IN_PAD), jnp.float32)], axis=0)

    w_big, w_emb, m0e, r32, r128 = pack_params(params)

    in_specs = [
        pl.BlockSpec((tb, IN_PAD), lambda i: (i, 0)),            # streamed input
        pl.BlockSpec((2, HIDDEN, HIDDEN), lambda i: (0, 0, 0)),  # mw1, mw2 (bf16)
        pl.BlockSpec((2, EMB2, EMB2), lambda i: (0, 0, 0)),      # ew1, ew2 (bf16)
        pl.BlockSpec((EMB2, HIDDEN), lambda i: (0, 0)),          # m0e (bf16)
        pl.BlockSpec((8, EMB2), lambda i: (0, 0)),               # f32 32-lane rows
        pl.BlockSpec((8, HIDDEN), lambda i: (0, 0)),             # f32 128-lane rows
    ]

    # advisory cost hint for XLA's scheduler
    flops_per_row = 2 * (2 * EMB2 * EMB2 + EMB2 * HIDDEN + 2 * HIDDEN * HIDDEN) + 1024
    weight_bytes = 2 * (int(w_big.size) + int(w_emb.size) + int(m0e.size)) \
        + 4 * (int(r32.size) + int(r128.size))
    cost = pl.CostEstimate(
        flops=int(Bp) * flops_per_row,
        transcendentals=0,
        bytes_accessed=int(Bp) * (IN_PAD + OUT_PAD) * 4 + weight_bytes,
    )

    out_pad = pl.pallas_call(
        scorenet_kernel,
        out_shape=jax.ShapeDtypeStruct((Bp, OUT_PAD), jnp.float32),
        grid=(Bp // tb,),
        in_specs=in_specs,
        out_specs=pl.BlockSpec((tb, OUT_PAD), lambda i: (i, 0)),
        compiler_params=pltpu.CompilerParams(
            dimension_semantics=("parallel",)),
        cost_estimate=cost,
    )(u, w_big, w_emb, m0e, r32, r128)

    return out_pad[:B, :INPUT_DIM]


# -------------------------- deterministic params ------------------------------
def make_params(key):
    def linear(key, din, dout, scale=0.1):
        kw, kb = jax.random.split(key)
        W = scale * jax.random.normal(kw, (din, dout), jnp.float32)
        b = scale * jax.random.normal(kb, (dout,), jnp.float32)
        return W, b

    keys = jax.random.split(key, 10)
    tW, tB_ = zip(*[linear(keys[0], 1, TIME_EMB),
                    linear(keys[1], TIME_EMB, TIME_EMB),
                    linear(keys[2], TIME_EMB, TIME_EMB)])
    hW, hB_ = zip(*[linear(keys[3], 1, THETA_EMB),
                    linear(keys[4], THETA_EMB, THETA_EMB),
                    linear(keys[5], THETA_EMB, THETA_EMB)])
    cat = INPUT_DIM + TIME_EMB + THETA_EMB
    mW, mB_ = zip(*[linear(keys[6], cat, HIDDEN),
                    linear(keys[7], HIDDEN, HIDDEN),
                    linear(keys[8], HIDDEN, HIDDEN),
                    linear(keys[9], HIDDEN, INPUT_DIM)])
    return {"time": (list(tW), list(tB_)),
            "theta": (list(hW), list(hB_)),
            "main": (list(mW), list(mB_))}


# ------------------------------- reference ------------------------------------
def scorenet_reference(x, t, theta, params):
    def mlp_emb(a, Ws, Bs):
        a = jnp.maximum(a @ Ws[0] + Bs[0], 0.0)
        a = jnp.maximum(a @ Ws[1] + Bs[1], 0.0)
        return a @ Ws[2] + Bs[2]

    tW, tB_ = params["time"]
    hW, hB_ = params["theta"]
    mW, mB_ = params["main"]
    te = mlp_emb(t, tW, tB_)
    he = mlp_emb(theta, hW, hB_)
    h = jnp.concatenate([x, te, he], axis=1)
    h = jnp.maximum(h @ mW[0] + mB_[0], 0.0)
    h = jnp.maximum(h @ mW[1] + mB_[1], 0.0)
    h = jnp.maximum(h @ mW[2] + mB_[2], 0.0)
    return h @ mW[3] + mB_[3]


if __name__ == "__main__":
    key = jax.random.PRNGKey(0)
    kp, kx, kt, kth = jax.random.split(key, 4)

    B = 16
    params = make_params(kp)
    x = jax.random.normal(kx, (B, INPUT_DIM), jnp.float32)
    t = jax.random.uniform(kt, (B, 1), jnp.float32)
    theta = jax.random.normal(kth, (B, 1), jnp.float32)

    out = scorenet_forward(x, t, theta, params)
    out = jax.block_until_ready(out)

    ref = scorenet_reference(x, t, theta, params)
    # The three hidden matmuls run in bf16 (f32 accumulation); first embedding
    # layer, x-row, biases and the final layer stay f32, so the error is small.
    # With MATMUL_DTYPE = jnp.float32 this matches to ~1e-5.
    np.testing.assert_allclose(np.asarray(out), np.asarray(ref),
                               rtol=2e-2, atol=2e-2)
    print("KERNEL_OK")
</pallas_src>

<mosaic_0001>
module attributes {stable_mosaic.version = 11 : i64} {
  func.func @scorenet_kernel(%arg0: i32, %arg1: memref<16x8xf32, #tpu.memory_space<vmem>>, %arg2: memref<2x128x128xbf16, #tpu.memory_space<vmem>>, %arg3: memref<2x32x32xbf16, #tpu.memory_space<vmem>>, %arg4: memref<32x128xbf16, #tpu.memory_space<vmem>>, %arg5: memref<8x32xf32, #tpu.memory_space<vmem>>, %arg6: memref<8x128xf32, #tpu.memory_space<vmem>>, %arg7: memref<16x8xf32, #tpu.memory_space<vmem>>) attributes {dimension_semantics = [#tpu.dimension_semantics<parallel>], iteration_bounds = array<i64: 1>, scalar_prefetch = 0 : i64, scratch_operands = 0 : i64, tpu.core_type = #tpu.core_type<tc>, window_params = [{transform_indices = @transform_0, window_bounds = array<i64: 16, 8>}, {pipeline_mode = #tpu.pipeline_mode<synchronous>, transform_indices = @transform_1, window_bounds = array<i64: 2, 128, 128>}, {pipeline_mode = #tpu.pipeline_mode<synchronous>, transform_indices = @transform_2, window_bounds = array<i64: 2, 32, 32>}, {pipeline_mode = #tpu.pipeline_mode<synchronous>, transform_indices = @transform_3, window_bounds = array<i64: 32, 128>}, {pipeline_mode = #tpu.pipeline_mode<synchronous>, transform_indices = @transform_4, window_bounds = array<i64: 8, 32>}, {pipeline_mode = #tpu.pipeline_mode<synchronous>, transform_indices = @transform_5, window_bounds = array<i64: 8, 128>}, {transform_indices = @transform_6, window_bounds = array<i64: 16, 8>}]} {
    %c0 = arith.constant 0 : index
    %c0_0 = arith.constant 0 : index
    %0 = vector.load %arg1[%c0, %c0_0] : memref<16x8xf32, #tpu.memory_space<vmem>>, vector<16x8xf32>
    %1 = vector.extract_strided_slice %0 {offsets = [0, 0], sizes = [16, 1], strides = [1, 1]} : vector<16x8xf32> to vector<16x1xf32>
    %2 = vector.extract_strided_slice %0 {offsets = [0, 1], sizes = [16, 1], strides = [1, 1]} : vector<16x8xf32> to vector<16x1xf32>
    %3 = vector.extract_strided_slice %0 {offsets = [0, 2], sizes = [16, 1], strides = [1, 1]} : vector<16x8xf32> to vector<16x1xf32>
    %c0_1 = arith.constant 0 : index
    %c0_2 = arith.constant 0 : index
    %4 = vector.load %arg5[%c0_1, %c0_2] : memref<8x32xf32, #tpu.memory_space<vmem>>, vector<8x32xf32>
    %c0_3 = arith.constant 0 : index
    %c0_4 = arith.constant 0 : index
    %5 = vector.load %arg6[%c0_3, %c0_4] : memref<8x128xf32, #tpu.memory_space<vmem>>, vector<8x128xf32>
    %6 = vector.extract_strided_slice %4 {offsets = [0, 0], sizes = [1, 32], strides = [1, 1]} : vector<8x32xf32> to vector<1x32xf32>
    %7 = vector.extract_strided_slice %4 {offsets = [1, 0], sizes = [1, 32], strides = [1, 1]} : vector<8x32xf32> to vector<1x32xf32>
    %8 = vector.extract_strided_slice %4 {offsets = [2, 0], sizes = [1, 32], strides = [1, 1]} : vector<8x32xf32> to vector<1x32xf32>
    %9 = vector.extract_strided_slice %4 {offsets = [3, 0], sizes = [1, 32], strides = [1, 1]} : vector<8x32xf32> to vector<1x32xf32>
    %10 = vector.extract_strided_slice %4 {offsets = [4, 0], sizes = [1, 32], strides = [1, 1]} : vector<8x32xf32> to vector<1x32xf32>
    %11 = vector.extract_strided_slice %5 {offsets = [0, 0], sizes = [1, 128], strides = [1, 1]} : vector<8x128xf32> to vector<1x128xf32>
    %12 = vector.extract_strided_slice %5 {offsets = [1, 0], sizes = [1, 128], strides = [1, 1]} : vector<8x128xf32> to vector<1x128xf32>
    %13 = vector.extract_strided_slice %5 {offsets = [2, 0], sizes = [1, 128], strides = [1, 1]} : vector<8x128xf32> to vector<1x128xf32>
    %14 = vector.extract_strided_slice %5 {offsets = [3, 0], sizes = [1, 128], strides = [1, 1]} : vector<8x128xf32> to vector<1x128xf32>
    %15 = vector.extract_strided_slice %5 {offsets = [4, 0], sizes = [1, 128], strides = [1, 1]} : vector<8x128xf32> to vector<1x128xf32>
    %16 = vector.extract_strided_slice %5 {offsets = [5, 0], sizes = [1, 1], strides = [1, 1]} : vector<8x128xf32> to vector<1x1xf32>
    %17 = vector.broadcast %1 : vector<16x1xf32> to vector<16x32xf32>
    %18 = vector.broadcast %6 : vector<1x32xf32> to vector<16x32xf32>
    %19 = arith.mulf %17, %18 : vector<16x32xf32>
    %20 = vector.broadcast %3 : vector<16x1xf32> to vector<16x32xf32>
    %21 = vector.broadcast %7 : vector<1x32xf32> to vector<16x32xf32>
    %22 = arith.mulf %20, %21 : vector<16x32xf32>
    %23 = arith.addf %19, %22 : vector<16x32xf32>
    %24 = vector.broadcast %8 : vector<1x32xf32> to vector<16x32xf32>
    %25 = arith.addf %23, %24 : vector<16x32xf32>
    %cst = arith.constant 0.000000e+00 : f32
    %26 = vector.broadcast %cst : f32 to vector<16x32xf32>
    %27 = arith.maximumf %25, %26 : vector<16x32xf32>
    %c0_5 = arith.constant 0 : index
    %c0_6 = arith.constant 0 : index
    %c0_7 = arith.constant 0 : index
    %28 = vector.load %arg3[%c0_5, %c0_6, %c0_7] : memref<2x32x32xbf16, #tpu.memory_space<vmem>>, vector<1x32x32xbf16>
    %29 = vector.shape_cast %28 : vector<1x32x32xbf16> to vector<32x32xbf16>
    %30 = arith.truncf %27 : vector<16x32xf32> to vector<16x32xbf16>
    %cst_8 = arith.constant dense<0.000000e+00> : vector<16x32xf32>
    %31 = tpu.matmul %30, %29, %cst_8 {dimension_numbers = #tpu.dot_dimension_numbers<[1], [0], [0], [1], [0, 0, 1, 1], [], []>} : vector<16x32xbf16>, vector<32x32xbf16>, vector<16x32xf32> -> vector<16x32xf32>
    %32 = vector.broadcast %9 : vector<1x32xf32> to vector<16x32xf32>
    %33 = arith.addf %31, %32 : vector<16x32xf32>
    %cst_9 = arith.constant 0.000000e+00 : f32
    %34 = vector.broadcast %cst_9 : f32 to vector<16x32xf32>
    %35 = arith.maximumf %33, %34 : vector<16x32xf32>
    %c1 = arith.constant 1 : index
    %c0_10 = arith.constant 0 : index
    %c0_11 = arith.constant 0 : index
    %36 = vector.load %arg3[%c1, %c0_10, %c0_11] : memref<2x32x32xbf16, #tpu.memory_space<vmem>>, vector<1x32x32xbf16>
    %37 = vector.shape_cast %36 : vector<1x32x32xbf16> to vector<32x32xbf16>
    %38 = arith.truncf %35 : vector<16x32xf32> to vector<16x32xbf16>
    %cst_12 = arith.constant dense<0.000000e+00> : vector<16x32xf32>
    %39 = tpu.matmul %38, %37, %cst_12 {dimension_numbers = #tpu.dot_dimension_numbers<[1], [0], [0], [1], [0, 0, 1, 1], [], []>} : vector<16x32xbf16>, vector<32x32xbf16>, vector<16x32xf32> -> vector<16x32xf32>
    %40 = vector.broadcast %10 : vector<1x32xf32> to vector<16x32xf32>
    %41 = arith.addf %39, %40 : vector<16x32xf32>
    %42 = vector.broadcast %2 : vector<16x1xf32> to vector<16x128xf32>
    %43 = vector.broadcast %11 : vector<1x128xf32> to vector<16x128xf32>
    %44 = arith.mulf %42, %43 : vector<16x128xf32>
    %c0_13 = arith.constant 0 : index
    %c0_14 = arith.constant 0 : index
    %45 = vector.load %arg4[%c0_13, %c0_14] : memref<32x128xbf16, #tpu.memory_space<vmem>>, vector<32x128xbf16>
    %46 = arith.truncf %41 : vector<16x32xf32> to vector<16x32xbf16>
    %cst_15 = arith.constant dense<0.000000e+00> : vector<16x128xf32>
    %47 = tpu.matmul %46, %45, %cst_15 {dimension_numbers = #tpu.dot_dimension_numbers<[1], [0], [0], [1], [0, 0, 1, 1], [], []>} : vector<16x32xbf16>, vector<32x128xbf16>, vector<16x128xf32> -> vector<16x128xf32>
    %48 = arith.addf %44, %47 : vector<16x128xf32>
    %49 = vector.broadcast %12 : vector<1x128xf32> to vector<16x128xf32>
    %50 = arith.addf %48, %49 : vector<16x128xf32>
    %cst_16 = arith.constant 0.000000e+00 : f32
    %51 = vector.broadcast %cst_16 : f32 to vector<16x128xf32>
    %52 = arith.maximumf %50, %51 : vector<16x128xf32>
    %c0_17 = arith.constant 0 : index
    %c0_18 = arith.constant 0 : index
    %c0_19 = arith.constant 0 : index
    %53 = vector.load %arg2[%c0_17, %c0_18, %c0_19] : memref<2x128x128xbf16, #tpu.memory_space<vmem>>, vector<1x128x128xbf16>
    %54 = vector.shape_cast %53 : vector<1x128x128xbf16> to vector<128x128xbf16>
    %55 = arith.truncf %52 : vector<16x128xf32> to vector<16x128xbf16>
    %cst_20 = arith.constant dense<0.000000e+00> : vector<16x128xf32>
    %56 = tpu.matmul %55, %54, %cst_20 {dimension_numbers = #tpu.dot_dimension_numbers<[1], [0], [0], [1], [0, 0, 1, 1], [], []>} : vector<16x128xbf16>, vector<128x128xbf16>, vector<16x128xf32> -> vector<16x128xf32>
    %57 = vector.broadcast %13 : vector<1x128xf32> to vector<16x128xf32>
    %58 = arith.addf %56, %57 : vector<16x128xf32>
    %cst_21 = arith.constant 0.000000e+00 : f32
    %59 = vector.broadcast %cst_21 : f32 to vector<16x128xf32>
    %60 = arith.maximumf %58, %59 : vector<16x128xf32>
    %c1_22 = arith.constant 1 : index
    %c0_23 = arith.constant 0 : index
    %c0_24 = arith.constant 0 : index
    %61 = vector.load %arg2[%c1_22, %c0_23, %c0_24] : memref<2x128x128xbf16, #tpu.memory_space<vmem>>, vector<1x128x128xbf16>
    %62 = vector.shape_cast %61 : vector<1x128x128xbf16> to vector<128x128xbf16>
    %63 = arith.truncf %60 : vector<16x128xf32> to vector<16x128xbf16>
    %cst_25 = arith.constant dense<0.000000e+00> : vector<16x128xf32>
    %64 = tpu.matmul %63, %62, %cst_25 {dimension_numbers = #tpu.dot_dimension_numbers<[1], [0], [0], [1], [0, 0, 1, 1], [], []>} : vector<16x128xbf16>, vector<128x128xbf16>, vector<16x128xf32> -> vector<16x128xf32>
    %65 = vector.broadcast %14 : vector<1x128xf32> to vector<16x128xf32>
    %66 = arith.addf %64, %65 : vector<16x128xf32>
    %cst_26 = arith.constant 0.000000e+00 : f32
    %67 = vector.broadcast %cst_26 : f32 to vector<16x128xf32>
    %68 = arith.maximumf %66, %67 : vector<16x128xf32>
    %69 = vector.broadcast %15 : vector<1x128xf32> to vector<16x128xf32>
    %70 = arith.mulf %68, %69 : vector<16x128xf32>
    %cst_27 = arith.constant dense<0.000000e+00> : vector<16xf32>
    %71 = vector.multi_reduction <add>, %70, %cst_27 [1] : vector<16x128xf32> to vector<16xf32>
    %72 = vector.shape_cast %71 : vector<16xf32> to vector<16x1xf32>
    %73 = vector.broadcast %16 : vector<1x1xf32> to vector<16x1xf32>
    %74 = arith.addf %72, %73 : vector<16x1xf32>
    %75 = vector.shape_cast %74 : vector<16x1xf32> to vector<16x1xf32>
    %76 = vector.broadcast %75 : vector<16x1xf32> to vector<16x8xf32>
    %c0_28 = arith.constant 0 : index
    %c0_29 = arith.constant 0 : index
    %77 = vector.load %arg7[%c0_28, %c0_29] : memref<16x8xf32, #tpu.memory_space<vmem>>, vector<16x8xf32>
    tpu.vector_store %arg7[%c0_28, %c0_29], %76 {strides = array<i32>} : memref<16x8xf32, #tpu.memory_space<vmem>>, vector<16x8xf32>,
    return
  }
  func.func @transform_0(%arg0: i32) -> (i32, i32) {
    %c0_i32 = arith.constant 0 : i32
    %c0_i32_0 = arith.constant 0 : i32
    return %arg0, %c0_i32 : i32, i32
  }
  func.func @transform_1(%arg0: i32) -> (i32, i32, i32) {
    %c0_i32 = arith.constant 0 : i32
    %c0_i32_0 = arith.constant 0 : i32
    %c0_i32_1 = arith.constant 0 : i32
    %c0_i32_2 = arith.constant 0 : i32
    return %c0_i32, %c0_i32_0, %c0_i32_1 : i32, i32, i32
  }
  func.func @transform_2(%arg0: i32) -> (i32, i32, i32) {
    %c0_i32 = arith.constant 0 : i32
    %c0_i32_0 = arith.constant 0 : i32
    %c0_i32_1 = arith.constant 0 : i32
    %c0_i32_2 = arith.constant 0 : i32
    return %c0_i32, %c0_i32_0, %c0_i32_1 : i32, i32, i32
  }
  func.func @transform_3(%arg0: i32) -> (i32, i32) {
    %c0_i32 = arith.constant 0 : i32
    %c0_i32_0 = arith.constant 0 : i32
    %c0_i32_1 = arith.constant 0 : i32
    return %c0_i32, %c0_i32_0 : i32, i32
  }
  func.func @transform_4(%arg0: i32) -> (i32, i32) {
    %c0_i32 = arith.constant 0 : i32
    %c0_i32_0 = arith.constant 0 : i32
    %c0_i32_1 = arith.constant 0 : i32
    return %c0_i32, %c0_i32_0 : i32, i32
  }
  func.func @transform_5(%arg0: i32) -> (i32, i32) {
    %c0_i32 = arith.constant 0 : i32
    %c0_i32_0 = arith.constant 0 : i32
    %c0_i32_1 = arith.constant 0 : i32
    return %c0_i32, %c0_i32_0 : i32, i32
  }
  func.func @transform_6(%arg0: i32) -> (i32, i32) {
    %c0_i32 = arith.constant 0 : i32
    %c0_i32_0 = arith.constant 0 : i32
    return %arg0, %c0_i32 : i32, i32
  }
}

</mosaic_0001>

<bundles_post_ra>
// kernel: tpu_custom_call.1
= control target key start
LH: loop header
LB: loop body
LE: loop exit
PB: predicated region body
PF: predicated region fallthrough
CT: control target
= control target key end

     0   :  { %11 = vsyncpa [#allocation3], 0  ;;  %s701_s0 = inlined_call_operand.vmem [shape: f32[16,8], index: 0, kind: input, shape index: {}]   ;;  %s702_s1 = inlined_call_operand.hbm [shape: bf16[2,128,128], index: 1, kind: input, shape index: {}]   ;;  %s703_s2 = inlined_call_operand.hbm [shape: bf16[2,32,32], index: 2, kind: input, shape index: {}]   ;;  %s704_s3 = inlined_call_operand.vmem [shape: bf16[32,128], index: 3, kind: input, shape index: {}]   ;;  %s705_s4 = inlined_call_operand.vmem [shape: f32[8,32], index: 4, kind: input, shape index: {}]   ;;  %s706_s5 = inlined_call_operand.hbm [shape: f32[8,128], index: 5, kind: input, shape index: {}]   ;;  %s707_s6 = inlined_call_operand.vmem [shape: f32[16,8], index: 6, kind: output, shape index: {}]  }
   0x1   :  { %12 = vsyncpa [#allocation5], 0  ;;  %s32_s23 = sshll.u32 %s703_s2, 4  ;;  %s625_s24 = smov [#allocation4]   ;;  %s33_s23 = int_to_ptr.hbm [resolvable:$true] %s32_s23 }
   0x2   :  { %s34_s25 = sshll.u32 %s625_s24, 4  ;;  %s19_s28 = sshll.u32 %s702_s1, 4  ;;  %s35_s25 = int_to_ptr.vmem [resolvable:$true] %s34_s25  ;;  %s20_s28 = int_to_ptr.hbm [resolvable:$true] %s19_s28 }
   0x3   :  { %s626_s29 = smov 64   ;;  %s627_s30 = smov 4  }
   0x4   :  { %40 = dma.hbm_to_vmem [thread:$0]  %s33_s23, 512, %s35_s25, [#allocation5], %s626_s29, %s626_s29, %s627_s30  }
   0x5   :  { %s628_s7 = smov [#allocation2]   ;;  %s50_s11 = sshll.u32 %s706_s5, 4  ;;  %s51_s11 = int_to_ptr.hbm [resolvable:$true] %s50_s11 }
   0x6   :  { %s21_s8 = sshll.u32 %s628_s7, 4  ;;  %s629_s2 = smov [#allocation6]   ;;  %s22_s8 = int_to_ptr.vmem [resolvable:$true] %s21_s8 }
   0x7   :  { %27 = dma.hbm_to_vmem [thread:$0]  %s20_s28, 2048, %s22_s8, [#allocation3], %s626_s29, %s626_s29, %s627_s30  }
   0x8   :  { %s52_s12 = sshll.u32 %s629_s2, 4  ;;  %s53_s12 = int_to_ptr.vmem [resolvable:$true] %s52_s12 }
   0x9   :  { %55 = dma.hbm_to_vmem [thread:$0]  %s51_s11, 128, %s53_s12, [#allocation5]  }
   0xa   :  { %621 = dma.done.wait [#allocation3], 2048  }
   0xb   :  { %622 = vsyncadd [#allocation3], 4294965248 }
   0xc   :  { %623 = dma.done.wait [#allocation5], 640  }
   0xd   :  { %624 = vsyncadd [#allocation5], 4294966656  ;;  %v630_v0 = vmov 2   ;;  %v631_v1 = vmov 0   ;;  %v69_v2 = vld [vmem:[%s701_s0] sm:$0xff]  ;;  %v70_v3 = vld [vmem:[%s701_s0 + $0x8] sm:$0xff] }
   0xe   :  { %546 = vset.pattern.permute.xlu1 %v630_v0  ;;  %545 = vset.pattern.permute.xlu0 %v631_v1  ;;  %v516_v4 = vld [vmem:[#allocation4 + $0x8] sm:$0xff]  ;;  %v515_v5 = vld [vmem:[#allocation4] sm:$0xff]  ;;  %v518_v6 = vld [vmem:[#allocation4 + $0x18] sm:$0xff]  ;;  %vm122_vm0 = vcmask 261120   ;;  %v632_v38 = vmov 1   ;;  %vm415_vm1 = vcmask 64512  }
   0xf   :  { %87 = vperm.xlu1 %546, %v69_v2   ;;  %75 = vperm.xlu0 %545, %v69_v2   ;;  %v71_v7 = vld [vmem:[%s705_s4] sm:$0xff]  ;;  %v517_v26 = vld [vmem:[#allocation4 + $0x10] sm:$0xff]  ;;  %v520_v35 = vld [vmem:[%s704_s3 + $0x8] sm:$0xff] }
  0x10   :  { %132 = vmatpush.bf16.msra.mxu1 %v516_v4  ;;  %v94_v8 = vperm.slane %v71_v7, 1  ;;  %v83_v9 = vperm.slane %v71_v7, 0  ;;  %v99_v14 = vperm.slane %v71_v7, 2  ;;  %v109_v28 = vperm.slane %v71_v7, 3  ;;  %215 = vmatpush.bf16.msra.mxu2 %v520_v35  ;;  %v519_v36 = vld [vmem:[%s704_s3] sm:$0xff]  ;;  %v528_v37 = vld [vmem:[#allocation2 + $0x38] sm:$0xff] }
  0x11   :  { %547 = vset.pattern.permute.xlu2 %v632_v38  ;;  %296 = vmatpush.bf16.msra.mxu3 %v528_v37  ;;  %v527_v39 = vld [vmem:[#allocation2 + $0x30] sm:$0xff]  ;;  %v148_v41 = vperm.slane %v71_v7, 4  ;;  %v526_v46 = vld [vmem:[#allocation2 + $0x28] sm:$0xff]  ;;  %v525_v47 = vld [vmem:[#allocation2 + $0x20] sm:$0xff] }
  0x12   :  { %179 = vperm.xlu2 %547, %v69_v2   ;;  %v524_v48 = vld [vmem:[#allocation2 + $0x18] sm:$0xff]  ;;  %v523_v49 = vld [vmem:[#allocation2 + $0x10] sm:$0xff]  ;;  %v522_v50 = vld [vmem:[#allocation2 + $0x8] sm:$0xff] }
  0x13   :  { %v521_v51 = vld [vmem:[#allocation2] sm:$0xff]  ;;  %v536_v52 = vld [vmem:[#allocation2 + $0x78] sm:$0xff]  ;;  %v535_v53 = vld [vmem:[#allocation2 + $0x70] sm:$0xff] }
  0x14   :  { %133 = vmatpush.bf16.msra.mxu1 %v515_v5  ;;  %216 = vmatpush.bf16.msra.mxu2 %v519_v36  ;;  %v534_v54 = vld [vmem:[#allocation2 + $0x68] sm:$0xff]  ;;  %v72_v55 = vld [vmem:[#allocation6] sm:$0xff] }
  0x15   :  { %297 = vmatpush.bf16.msra.mxu3 %v527_v39  ;;  %379 = vmatpush.bf16.msra.mxu0 %v536_v52  ;;  %v533_v57 = vld [vmem:[#allocation2 + $0x60] sm:$0xff]  ;;  %v186_v58 = vperm.slane %v72_v55, 0  ;;  %v225_v63 = vperm.slane %v72_v55, 1 }
  0x17   :  { %91 = vperm.xlu1 %546, %v70_v3   ;;  %80 = vperm.xlu0 %545, %v70_v3  }
  0x18   :  { %170 = vmatpush.bf16.msrb.mxu1 %v518_v6 }
  0x19   :  { %298 = vmatpush.bf16.msra.mxu3 %v526_v46  ;;  %380 = vmatpush.bf16.msra.mxu0 %v535_v53 }
  0x1a   :  { %183 = vperm.xlu2 %547, %v70_v3  }
  0x1c   :  { %171 = vmatpush.bf16.msrb.mxu1 %v517_v26 }
  0x1d   :  { %299 = vmatpush.bf16.msra.mxu3 %v525_v47  ;;  %381 = vmatpush.bf16.msra.mxu0 %v534_v54 }
  0x21   :  { %300 = vmatpush.bf16.msra.mxu3 %v524_v48  ;;  %382 = vmatpush.bf16.msra.mxu0 %v533_v57 }
  0x22   :  { %548 = vset.pattern.permute.xlu2 %v631_v1 }
  0x25   :  { %301 = vmatpush.bf16.msra.mxu3 %v523_v49 }
  0x29   :  { %302 = vmatpush.bf16.msra.mxu3 %v522_v50 }
  0x2d   :  { %303 = vmatpush.bf16.msra.mxu3 %v521_v51 }
  0x6c   :  { %v180_v56 = vpop.permute.xlu2 %179 }
  0x6d   :  { %v187_v60 = vmul.f32 %v186_v58, %v180_v56 }
  0x74   :  { %v184_v61 = vpop.permute.xlu2 %183 }
  0x75   :  { %v188_v0 = vmul.f32 %v186_v58, %v184_v61 }
  0x81   :  { %v88_v10 = vpop.permute.xlu1 %87  ;;  %v76_v11 = vpop.permute.xlu0 %75 }
  0x82   :  { %v95_v12 = vmul.f32 %v94_v8, %v88_v10  ;;  %v84_v13 = vmul.f32 %v83_v9, %v76_v11  ;;  %v530_v10 = vld [vmem:[#allocation2 + $0x48] sm:$0xff]  ;;  %v529_v11 = vld [vmem:[#allocation2 + $0x40] sm:$0xff] }
  0x84   :  { %v97_v15 = vadd.f32 %v95_v12, %v84_v13  ;;  %v247_v13 = vperm.slane %v72_v55, 2 }
  0x86   :  { %v100_v20 = vadd.f32 %v99_v14, %v97_v15 }
  0x88   :  { %v102_v23 = vmax.f32 %v100_v20, 0.0  ;;  %v330_v20 = vperm.slane %v72_v55, 3 }
  0x89   :  { %v92_v16 = vpop.permute.xlu1 %91  ;;  %v81_v17 = vpop.permute.xlu0 %80 }
  0x8a   :  { %v96_v18 = vmul.f32 %v94_v8, %v92_v16  ;;  %v85_v19 = vmul.f32 %v83_v9, %v81_v17  ;;  %v532_v8 = vld [vmem:[#allocation2 + $0x58] sm:$0xff]  ;;  %v531_v9 = vld [vmem:[#allocation2 + $0x50] sm:$0xff] }
  0x8b   :  { %383 = vmatpush.bf16.msra.mxu0 %v532_v8 }
  0x8c   :  { %v98_v21 = vadd.f32 %v96_v18, %v85_v19 }
  0x8e   :  { %v101_v22 = vadd.f32 %v99_v14, %v98_v21 }
  0x8f   :  { %384 = vmatpush.bf16.msra.mxu0 %v531_v9 }
  0x90   :  { %v103_v24 = vmax.f32 %v101_v22, 0.0 }
  0x92   :  { %v108_v25 = vpack.c.bf16 %v103_v24, %v102_v23  ;;  %v395_v23 = vperm.slane %v72_v55, 4 }
  0x93   :  { %385 = vmatpush.bf16.msra.mxu0 %v530_v10 }
  0x94   :  { %432 = vmatmul.msk.bf16.vlgmr.msra.gmra.mxu1 %vm122_vm0, %v108_v25 }
  0x97   :  { %386 = vmatpush.bf16.msra.mxu0 %v529_v11 }
 0x111   :  { %v135_v27 = vpop.f32.mrf.mxu1 }
 0x112   :  { %v136_v29 = vadd.f32 %v135_v27, %v109_v28 }
 0x114   :  { %v140_v32 = vmax.f32 %v136_v29, 0.0 }
 0x119   :  { %v137_v30 = vpop.f32.mrf.mxu1 }
 0x11a   :  { %v138_v31 = vadd.f32 %v137_v30, %v109_v28  ;;  %v402_v30 = vperm.slane %v72_v55, 5 }
 0x11c   :  { %v141_v33 = vmax.f32 %v138_v31, 0.0 }
 0x11e   :  { %v147_v34 = vpack.c.bf16 %v141_v33, %v140_v32 }
 0x120   :  { %441 = vmatmul.msk.bf16.vlgmr.msrb.gmra.mxu1 %vm122_vm0, %v147_v34 }
 0x19d   :  { %v173_v40 = vpop.f32.mrf.mxu1 }
 0x19e   :  { %v174_v43 = vadd.f32 %v173_v40, %v148_v41 }
 0x1a5   :  { %v175_v42 = vpop.f32.mrf.mxu1 }
 0x1a6   :  { %v176_v44 = vadd.f32 %v175_v42, %v148_v41 }
 0x1a8   :  { %v193_v45 = vpack.c.bf16 %v176_v44, %v174_v43 }
 0x1aa   :  { %450 = vmatmul.msk.bf16.vlgmr.msra.gmra.mxu2 %vm122_vm0, %v193_v45 }
 0x22d   :  { %v218_v59 = vpop.f32.mrf.mxu2 }
 0x22e   :  { %v223_v62 = vadd.f32 %v218_v59, %v187_v60 }
 0x230   :  { %v226_v2 = vadd.f32 %v225_v63, %v223_v62 }
 0x232   :  { %v228_v5 = vmax.f32 %v226_v2, 0.0 }
 0x235   :  { %v220_v1 = vpop.f32.mrf.mxu2 }
 0x236   :  { %v224_v3 = vadd.f32 %v220_v1, %v188_v0 }
 0x238   :  { %v227_v4 = vadd.f32 %v225_v63, %v224_v3 }
 0x23a   :  { %v229_v6 = vmax.f32 %v227_v4, 0.0 }
 0x23c   :  { %v246_v7 = vpack.c.bf16 %v229_v6, %v228_v5 }
 0x23e   :  { %304 = vmatmul.bf16.vlgmr.msra.gmra.mxu3 %v246_v7 }
 0x2c1   :  { %v305_v12 = vpop.f32.mrf.mxu3 }
 0x2c2   :  { %v306_v14 = vadd.f32 %v305_v12, %v247_v13 }
 0x2c4   :  { %v310_v17 = vmax.f32 %v306_v14, 0.0 }
 0x2c9   :  { %v307_v15 = vpop.f32.mrf.mxu3 }
 0x2ca   :  { %v308_v16 = vadd.f32 %v307_v15, %v247_v13 }
 0x2cc   :  { %v311_v18 = vmax.f32 %v308_v16, 0.0 }
 0x2ce   :  { %v329_v19 = vpack.c.bf16 %v311_v18, %v310_v17 }
 0x2d0   :  { %387 = vmatmul.bf16.vlgmr.msra.gmra.mxu0 %v329_v19 }
 0x34d   :  { %v388_v21 = vpop.f32.mrf.mxu0 }
 0x34e   :  { %v389_v22 = vadd.f32 %v388_v21, %v330_v20 }
 0x350   :  { %v393_v24 = vmax.f32 %v389_v22, 0.0 }
 0x352   :  { %v396_v25 = vmul.f32 %v395_v23, %v393_v24 }
 0x354   :  { %398 = vadd.xlane.f32.xlu0 %v396_v25 }
 0x355   :  { %v390_v26 = vpop.f32.mrf.mxu0 }
 0x356   :  { %v391_v27 = vadd.f32 %v390_v26, %v330_v20 }
 0x358   :  { %v394_v28 = vmax.f32 %v391_v27, 0.0 }
 0x35a   :  { %v397_v29 = vmul.f32 %v395_v23, %v394_v28 }
 0x35c   :  { %400 = vadd.xlane.f32.xlu1 %v397_v29 }
 0x3c7   :  { %v399_v31 = vpop.xlane.xlu0 %398 }
 0x3c8   :  { %v403_v32 = vadd.f32 %v402_v30, %v399_v31 }
 0x3ca   :  { %407 = vperm.xlu2 %548, %v403_v32  }
 0x3cf   :  { %v401_v33 = vpop.xlane.xlu1 %400 }
 0x3d0   :  { %v404_v34 = vadd.f32 %v402_v30, %v401_v33 }
 0x3d2   :  { %412 = vperm.xlu2 %548, %v404_v34  }
 0x424   :  { %v408_v35 = vpop.permute.xlu2 %407 }
 0x425   :  { %416 = vst.msk [vmem:[%s707_s6] sm:$0xff] %vm415_vm1, %v408_v35 }
 0x42c   :  { %v413_v36 = vpop.permute.xlu2 %412 }
 0x42d   :  { %417 = vst.msk [vmem:[%s707_s6 + $0x8] sm:$0xff] %vm415_vm1, %v413_v36 }
 0x42e   :  { %422 = vsyncpa [#allocation3], 1 }
 0x42f   :  { %423 = vsyncpa [#allocation5], 1 }

</bundles_post_ra>
